<compile_context>
chip_gen: v7x
topology: tpu7x:2x2x1
jax: 0.10.0
libtpu: 0.0.40
codegen_flags: <defaults>
</compile_context>

<pallas_src>
import jax
import jax.numpy as jnp
from jax.experimental import pallas as pl
from jax.experimental.pallas import tpu as pltpu

_LN_EPS = 1e-5


def _sublane(dtype) -> int:
    # sublane packing of a vreg for a given element width
    return {4: 8, 2: 16, 1: 32}.get(jnp.dtype(dtype).itemsize, 8)


def _round_up(x: int, m: int) -> int:
    return ((x + m - 1) // m) * m


def _lwf_ln_kernel(w_ref, gamma_ref, beta_ref, x_ref, o_ref, acc_ref):
    """Grid = (row_tiles, L); axis 1 (layers) is the reduction axis.

    w_ref:     SMEM (L,) f32       -- softmax'd layer weights
    gamma_ref: VMEM (1, H) f32
    beta_ref:  VMEM (1, H) f32
    x_ref:     VMEM (1, tile_rows, H)  -- one layer's slab for this row tile
    o_ref:     VMEM (tile_rows, H)
    acc_ref:   VMEM (tile_rows, H) f32 scratch accumulator (persists across grid steps)
    """
    l = pl.program_id(1)
    num_layers = pl.num_programs(1)

    @pl.when(l == 0)
    def _():
        acc_ref[...] = jnp.zeros_like(acc_ref)

    # Accumulate this layer's contribution in f32 (input may be bf16 in HBM).
    acc_ref[...] += w_ref[l] * x_ref[0].astype(jnp.float32)

    @pl.when(l == num_layers - 1)
    def _():
        acc = acc_ref[...]
        hidden = acc.shape[-1]
        inv_h = jnp.float32(1.0 / hidden)
        # Two-pass LN statistics (VPU/XLU work hidden under HBM time; safer than
        # E[x^2] - mean^2 when |mean| >> std).
        mean = jnp.sum(acc, axis=-1, keepdims=True) * inv_h
        centered = acc - mean
        var = jnp.sum(centered * centered, axis=-1, keepdims=True) * inv_h
        inv = jax.lax.rsqrt(var + _LN_EPS)
        y = centered * inv * gamma_ref[...] + beta_ref[...]
        o_ref[...] = y.astype(o_ref.dtype)


def layer_weighted_features(layer_features, weights, gamma, beta, *, tile_rows=None):
    """layer_features: (L, B, S, H) stacked layer outputs; weights: (L,); gamma/beta: (H,).

    For best bandwidth pass layer_features as bf16 (accumulation is f32 inside the
    kernel) and use H that is a multiple of 128 (lane-dense, unmasked stores).
    """
    L, B, S, H = layer_features.shape
    R = B * S
    out_dtype = layer_features.dtype
    in_bytes = jnp.dtype(layer_features.dtype).itemsize
    out_bytes = jnp.dtype(out_dtype).itemsize
    sub = max(_sublane(layer_features.dtype), _sublane(out_dtype))

    # --- row-tile sizing: ~512 rows (HBM roofline sweet spot), but keep enough row
    # --- tiles for megacore sharding of the parallel axis on multi-TC chips.
    if tile_rows is None:
        tile_rows = min(512, max(sub, _round_up(pl.cdiv(R, 8), sub)))
    if R <= tile_rows:
        tile_rows = R                       # full-extent block: always layout-legal
    else:
        tile_rows = max(sub, (tile_rows // sub) * sub)
    grid_rows = pl.cdiv(R, tile_rows)       # last block may be partial; no padding

    # (L, B, S, H) -> (L, R, H): contiguous reshape, no data movement.
    x = layer_features.reshape(L, R, H)

    # Tiny O(L)/O(H) parameter glue stays in plain JAX.
    norm_w = jax.nn.softmax(weights.astype(jnp.float32))
    gamma2 = gamma.astype(jnp.float32).reshape(1, H)
    beta2 = beta.astype(jnp.float32).reshape(1, H)

    # --- VMEM budget from the actual chosen block sizes --------------------------------
    try:
        vmem_cap = pltpu.get_tpu_info().vmem_capacity_bytes   # 128 MiB v5e/v6e, 64 MiB v7x
    except Exception:
        vmem_cap = 64 * 1024 * 1024                           # conservative (v7x) fallback
    blk = tile_rows * H
    footprint = (2 * blk * in_bytes        # double-buffered input block (one layer slab)
                 + 2 * blk * out_bytes     # double-buffered output block
                 + blk * 4                 # f32 accumulator scratch
                 + 4 * H * 4               # gamma/beta copies
                 + 6 * blk * 4)            # elementwise temps headroom (centered, y, ...)
    vmem_limit = int(min(int(0.9 * vmem_cap),
                         max(32 * 1024 * 1024, footprint + (8 << 20))))

    cost = pl.CostEstimate(
        flops=(2 * L + 10) * R * H,
        transcendentals=R,
        bytes_accessed=R * H * (L * in_bytes + out_bytes) + (L + 2 * H) * 4,
    )

    out = pl.pallas_call(
        _lwf_ln_kernel,
        out_shape=jax.ShapeDtypeStruct((R, H), out_dtype),
        grid_spec=pltpu.PrefetchScalarGridSpec(
            num_scalar_prefetch=0,
            grid=(grid_rows, L),                                   # layers innermost
            in_specs=[
                pl.BlockSpec(memory_space=pltpu.MemorySpace.SMEM),  # norm_w (L,)
                pl.BlockSpec((1, H), lambda i, l: (0, 0)),          # gamma
                pl.BlockSpec((1, H), lambda i, l: (0, 0)),          # beta
                pl.BlockSpec((1, tile_rows, H), lambda i, l: (l, i, 0)),  # one layer slab
            ],
            out_specs=pl.BlockSpec((tile_rows, H), lambda i, l: (i, 0)),
            scratch_shapes=[pltpu.VMEM((tile_rows, H), jnp.float32)],
        ),
        compiler_params=pltpu.CompilerParams(
            dimension_semantics=("parallel", "arbitrary"),
            vmem_limit_bytes=vmem_limit,
        ),
        cost_estimate=cost,
    )(norm_w, gamma2, beta2, x)

    return out.reshape(B, S, H)


def _reference(layer_features, weights, gamma, beta):
    norm_w = jax.nn.softmax(weights.astype(jnp.float32))
    xs = layer_features.astype(jnp.float32)
    ws = jnp.einsum("l,lbsh->bsh", norm_w, xs)
    mean = jnp.mean(ws, axis=-1, keepdims=True)
    var = jnp.mean((ws - mean) ** 2, axis=-1, keepdims=True)
    return ((ws - mean) * jax.lax.rsqrt(var + _LN_EPS)) * gamma.astype(jnp.float32) \
        + beta.astype(jnp.float32)


if __name__ == "__main__":
    key = jax.random.PRNGKey(0)
    k0, k1, k2, k3 = jax.random.split(key, 4)

    # --- 1) f32, lane-dense, multi row-tile grid ---------------------------------------
    L, B, S, H = 4, 2, 8, 128
    x = jax.random.normal(k0, (L, B, S, H), dtype=jnp.float32)
    weights = jnp.ones((L,), dtype=jnp.float32) / L          # nn.Parameter(ones(L)/L)
    gamma = jnp.ones((H,), dtype=jnp.float32)                # LayerNorm weight
    beta = jnp.zeros((H,), dtype=jnp.float32)                # LayerNorm bias

    out = jax.block_until_ready(layer_weighted_features(x, weights, gamma, beta))
    ref = _reference(x, weights, gamma, beta)
    assert out.shape == (B, S, H)
    assert jnp.allclose(out, ref, atol=1e-4, rtol=1e-4), "f32 mismatch vs reference"

    # --- 2) bf16 HBM residency, ragged row count (full-extent single row tile) ---------
    Lb, Bb, Sb, Hb = 6, 3, 5, 128
    xb = jax.random.normal(k1, (Lb, Bb, Sb, Hb), dtype=jnp.float32).astype(jnp.bfloat16)
    wb = jax.random.normal(k2, (Lb,), dtype=jnp.float32) * 0.1 + 1.0 / Lb
    gb = 1.0 + 0.1 * jax.random.normal(k3, (Hb,), dtype=jnp.float32)
    bb = 0.05 * jax.random.normal(k0, (Hb,), dtype=jnp.float32)

    out_b = jax.block_until_ready(layer_weighted_features(xb, wb, gb, bb))
    ref_b = _reference(xb, wb, gb, bb)
    assert out_b.shape == (Bb, Sb, Hb)
    assert jnp.allclose(out_b.astype(jnp.float32), ref_b, atol=3e-2, rtol=3e-2), \
        "bf16 mismatch vs reference"

    # --- 3) ragged R with a partial final row block (the removed-pad path) -------------
    Lc, Bc, Sc, Hc = 3, 2, 9, 128         # R = 18, tile_rows = 8 -> 3 tiles, last partial
    xc = jax.random.normal(k2, (Lc, Bc, Sc, Hc), dtype=jnp.float32)
    wc = jnp.ones((Lc,), dtype=jnp.float32) / Lc
    gc = 1.0 + 0.05 * jax.random.normal(k1, (Hc,), dtype=jnp.float32)
    bc = 0.1 * jax.random.normal(k3, (Hc,), dtype=jnp.float32)

    out_c = jax.block_until_ready(
        layer_weighted_features(xc, wc, gc, bc, tile_rows=8))
    ref_c = _reference(xc, wc, gc, bc)
    assert out_c.shape == (Bc, Sc, Hc)
    assert jnp.allclose(out_c, ref_c, atol=1e-4, rtol=1e-4), "ragged mismatch vs reference"

    print("KERNEL_OK")
</pallas_src>

<mosaic_0001>
module attributes {stable_mosaic.version = 11 : i64} {
  func.func @_lwf_ln_kernel(%arg0: i32, %arg1: i32, %arg2: memref<4xf32, #tpu.memory_space<smem>>, %arg3: memref<1x128xf32, #tpu.memory_space<vmem>>, %arg4: memref<1x128xf32, #tpu.memory_space<vmem>>, %arg5: memref<1x8x128xf32, #tpu.memory_space<vmem>>, %arg6: memref<8x128xf32, #tpu.memory_space<vmem>>, %arg7: memref<8x128xf32, #tpu.memory_space<vmem>>) attributes {dimension_semantics = [#tpu.dimension_semantics<parallel>, #tpu.dimension_semantics<arbitrary>], iteration_bounds = array<i64: 2, 4>, scalar_prefetch = 0 : i64, scratch_operands = 1 : i64, tpu.core_type = #tpu.core_type<tc>, window_params = [{transform_indices = @transform_0, window_bounds = array<i64: 4>}, {pipeline_mode = #tpu.pipeline_mode<synchronous>, transform_indices = @transform_1, window_bounds = array<i64: 1, 128>}, {pipeline_mode = #tpu.pipeline_mode<synchronous>, transform_indices = @transform_2, window_bounds = array<i64: 1, 128>}, {transform_indices = @transform_3, window_bounds = array<i64: 1, 8, 128>}, {transform_indices = @transform_4, window_bounds = array<i64: 8, 128>}]} {
    %c0_i32 = arith.constant 0 : i32
    %0 = arith.cmpi eq, %arg1, %c0_i32 : i32
    %1 = arith.extui %0 : i1 to i32
    %c0_i32_0 = arith.constant 0 : i32
    %2 = arith.cmpi ne, %1, %c0_i32_0 : i32
    scf.if %2 {
      %cst = arith.constant 0.000000e+00 : f32
      %15 = vector.broadcast %cst : f32 to vector<8x128xf32>
      %c0_8 = arith.constant 0 : index
      %c0_9 = arith.constant 0 : index
      %16 = vector.load %arg7[%c0_8, %c0_9] : memref<8x128xf32, #tpu.memory_space<vmem>>, vector<8x128xf32>
      tpu.vector_store %arg7[%c0_8, %c0_9], %15 {strides = array<i32>} : memref<8x128xf32, #tpu.memory_space<vmem>>, vector<8x128xf32>,
    } else {
    }
    %c0 = arith.constant 0 : index
    %c0_1 = arith.constant 0 : index
    %3 = vector.load %arg7[%c0, %c0_1] : memref<8x128xf32, #tpu.memory_space<vmem>>, vector<8x128xf32>
    %4 = arith.index_cast %arg1 : i32 to index
    %5 = memref.load %arg2[%4] : memref<4xf32, #tpu.memory_space<smem>>
    %c0_2 = arith.constant 0 : index
    %c0_3 = arith.constant 0 : index
    %c0_4 = arith.constant 0 : index
    %6 = vector.load %arg5[%c0_2, %c0_3, %c0_4] : memref<1x8x128xf32, #tpu.memory_space<vmem>>, vector<1x8x128xf32>
    %7 = vector.shape_cast %6 : vector<1x8x128xf32> to vector<8x128xf32>
    %8 = vector.broadcast %5 : f32 to vector<8x128xf32>
    %9 = arith.mulf %8, %7 : vector<8x128xf32>
    %10 = arith.addf %3, %9 : vector<8x128xf32>
    %c0_5 = arith.constant 0 : index
    %c0_6 = arith.constant 0 : index
    %11 = vector.load %arg7[%c0_5, %c0_6] : memref<8x128xf32, #tpu.memory_space<vmem>>, vector<8x128xf32>
    tpu.vector_store %arg7[%c0_5, %c0_6], %10 {strides = array<i32>} : memref<8x128xf32, #tpu.memory_space<vmem>>, vector<8x128xf32>,
    %c3_i32 = arith.constant 3 : i32
    %12 = arith.cmpi eq, %arg1, %c3_i32 : i32
    %13 = arith.extui %12 : i1 to i32
    %c0_i32_7 = arith.constant 0 : i32
    %14 = arith.cmpi ne, %13, %c0_i32_7 : i32
    scf.if %14 {
      %c0_8 = arith.constant 0 : index
      %c0_9 = arith.constant 0 : index
      %15 = vector.load %arg7[%c0_8, %c0_9] : memref<8x128xf32, #tpu.memory_space<vmem>>, vector<8x128xf32>
      %cst = arith.constant dense<0.000000e+00> : vector<8xf32>
      %16 = vector.multi_reduction <add>, %15, %cst [1] : vector<8x128xf32> to vector<8xf32>
      %17 = vector.shape_cast %16 : vector<8xf32> to vector<8x1xf32>
      %cst_10 = arith.constant 7.812500e-03 : f32
      %18 = vector.broadcast %cst_10 : f32 to vector<8x1xf32>
      %19 = arith.mulf %17, %18 : vector<8x1xf32>
      %20 = vector.broadcast %19 : vector<8x1xf32> to vector<8x128xf32>
      %21 = arith.subf %15, %20 : vector<8x128xf32>
      %22 = arith.mulf %21, %21 : vector<8x128xf32>
      %cst_11 = arith.constant dense<0.000000e+00> : vector<8xf32>
      %23 = vector.multi_reduction <add>, %22, %cst_11 [1] : vector<8x128xf32> to vector<8xf32>
      %24 = vector.shape_cast %23 : vector<8xf32> to vector<8x1xf32>
      %cst_12 = arith.constant 7.812500e-03 : f32
      %25 = vector.broadcast %cst_12 : f32 to vector<8x1xf32>
      %26 = arith.mulf %24, %25 : vector<8x1xf32>
      %cst_13 = arith.constant 9.99999974E-6 : f32
      %27 = vector.broadcast %cst_13 : f32 to vector<8x1xf32>
      %28 = arith.addf %26, %27 : vector<8x1xf32>
      %29 = math.rsqrt %28 : vector<8x1xf32>
      %30 = vector.broadcast %29 : vector<8x1xf32> to vector<8x128xf32>
      %31 = arith.mulf %21, %30 : vector<8x128xf32>
      %c0_14 = arith.constant 0 : index
      %c0_15 = arith.constant 0 : index
      %32 = vector.load %arg3[%c0_14, %c0_15] : memref<1x128xf32, #tpu.memory_space<vmem>>, vector<1x128xf32>
      %33 = vector.broadcast %32 : vector<1x128xf32> to vector<8x128xf32>
      %34 = arith.mulf %31, %33 : vector<8x128xf32>
      %c0_16 = arith.constant 0 : index
      %c0_17 = arith.constant 0 : index
      %35 = vector.load %arg4[%c0_16, %c0_17] : memref<1x128xf32, #tpu.memory_space<vmem>>, vector<1x128xf32>
      %36 = vector.broadcast %35 : vector<1x128xf32> to vector<8x128xf32>
      %37 = arith.addf %34, %36 : vector<8x128xf32>
      %c0_18 = arith.constant 0 : index
      %c0_19 = arith.constant 0 : index
      %38 = vector.load %arg6[%c0_18, %c0_19] : memref<8x128xf32, #tpu.memory_space<vmem>>, vector<8x128xf32>
      tpu.vector_store %arg6[%c0_18, %c0_19], %37 {strides = array<i32>} : memref<8x128xf32, #tpu.memory_space<vmem>>, vector<8x128xf32>,
    } else {
    }
    return
  }
  func.func @transform_0(%arg0: i32, %arg1: i32) -> i32 {
    %c0_i32 = arith.constant 0 : i32
    %c0_i32_0 = arith.constant 0 : i32
    return %c0_i32 : i32
  }
  func.func @transform_1(%arg0: i32, %arg1: i32) -> (i32, i32) {
    %c0_i32 = arith.constant 0 : i32
    %c0_i32_0 = arith.constant 0 : i32
    %c0_i32_1 = arith.constant 0 : i32
    return %c0_i32, %c0_i32_0 : i32, i32
  }
  func.func @transform_2(%arg0: i32, %arg1: i32) -> (i32, i32) {
    %c0_i32 = arith.constant 0 : i32
    %c0_i32_0 = arith.constant 0 : i32
    %c0_i32_1 = arith.constant 0 : i32
    return %c0_i32, %c0_i32_0 : i32, i32
  }
  func.func @transform_3(%arg0: i32, %arg1: i32) -> (i32, i32, i32) {
    %c0_i32 = arith.constant 0 : i32
    %c0_i32_0 = arith.constant 0 : i32
    return %arg1, %arg0, %c0_i32 : i32, i32, i32
  }
  func.func @transform_4(%arg0: i32, %arg1: i32) -> (i32, i32) {
    %c0_i32 = arith.constant 0 : i32
    %c0_i32_0 = arith.constant 0 : i32
    return %arg0, %c0_i32 : i32, i32
  }
}

</mosaic_0001>

<bundles_post_ra>
// kernel: tpu_custom_call.1
= control target key start
LH: loop header
LB: loop body
LE: loop exit
PB: predicated region body
PF: predicated region fallthrough
CT: control target
= control target key end

     0   :  { %s995_s0 = inlined_call_operand.hbm [shape: f32[4], index: 0, kind: input, shape index: {}]   ;;  %s996_s1 = inlined_call_operand.vmem [shape: f32[1,128], index: 1, kind: input, shape index: {}]   ;;  %s997_s2 = inlined_call_operand.vmem [shape: f32[1,128], index: 2, kind: input, shape index: {}]   ;;  %s998_s3 = inlined_call_operand.hbm [shape: f32[4,16,128], index: 3, kind: input, shape index: {}]   ;;  %s999_s4 = inlined_call_operand.hbm [shape: f32[16,128], index: 4, kind: output, shape index: {}]  }
   0x1   :  { %1011 = sst [smem:[#allocation18_spill]] %s995_s0 }
   0x2   :  { %1012 = sst [smem:[#allocation19_spill]] %s997_s2 }
   0x3   :  { %1013 = sst [smem:[#allocation20_spill]] %s999_s4 }
   0x4   :  { %9 = vsyncpa [#allocation6], 0 }
   0x5   :  { %10 = vsyncpa [#allocation4], 0 }
   0x6   :  { %12 = vsyncpa [#allocation4 + $0x1], 0 }
   0x7   :  { %13 = vsyncpa [#allocation5], 0 }
   0x8   :  { %15 = vsyncpa [#allocation5 + $0x1], 0  ;;  %s731_s15 = smov 0   ;;  %s733_s16 = smov 0  }
   0x9   :  { %s735_s17 = smov 0   ;;  %s737_s18 = smov 0  }
   0xa   :  { %s739_s19 = smov 0   ;;  %s741_s20 = smov 0  }
   0xb   :  { %s743_s21 = smov 0   ;;  %s745_s22 = smov 0  }
   0xc   :  { %s747_s23 = smov 0   ;;  %s749_s24 = smov 0  }
   0xd   :  { %s751_s25 = smov 0  }
   0xe LB: > { %1014 = sst [smem:[#allocation12_spill]] %s660_s15  ;;  %s395_s26 = sadd.s32 4294967295, %s700_s25   ;;  %s700_s25 = sphi %s751_s25, %s21_s25   ;;  %s696_s24 = sphi %s749_s24, %s1050_s24   ;;  %s692_s23 = sphi %s747_s23, %s1049_s23   ;;  %s688_s22 = sphi %s745_s22, %s1048_s22   ;;  %s684_s21 = sphi %s743_s21, %s1047_s21   ;;  %s680_s20 = sphi %s741_s20, %s1046_s20   ;;  %s676_s19 = sphi %s739_s19, %s1045_s19   ;;  %s672_s18 = sphi %s737_s18, %s1044_s18   ;;  %s668_s17 = sphi %s735_s17, %s1043_s17   ;;  %s664_s16 = sphi %s733_s16, %s1042_s16   ;;  %s660_s15 = sphi %s731_s15, %s1041_s15  }
   0xf   : > { %1015 = sst [smem:[#allocation13_spill]] %s688_s22  ;;  %s396_s27 = sadd.s32 4294967294, %s700_s25  }
  0x10   : > { %p118_p0 = scmp.ne.s32.totalorder %s676_s19, %s672_s18  ;;  %p787_p1 = scmp.eq.s32.totalorder %s395_s26, 0 }
  0x11   : > { %p141_p2 = scmp.ne.s32.totalorder %s668_s17, %s664_s16  ;;  %p142_p4 = scmp.eq.s32.totalorder %s395_s26, 7 }
  0x12   : > { %s1016_s28 = scalar_select %p787_p1, 1, 0 }
  0x13   : > { %p796_p3 = por %p787_p1, %p118_p0  ;;  %p147_p5 = scmp.ne.s32.totalorder %s664_s16, %s660_s15 }
  0x14   : > { %p148_p6 = scmp.eq.s32.totalorder %s396_s27, 7  ;;  %p802_p7 = por %p142_p4, %p141_p2 }
  0x15   : > { %s1017_s30 = scalar_select %p796_p3, 1, 0 }
  0x16   : > { %s1018_s5 = scalar_select %p802_p7, 1, 0 }
  0x17   : > { %p397_p8 = scmp.ge.s32.totalorder %s700_s25, 1  ;;  %p807_p9 = por %p148_p6, %p147_p5 }
  0x18   : > { %1019 = sst [smem:[#allocation14_spill]] %s1018_s5  ;;  %p155_p10 = scmp.lt.s32.totalorder %s700_s25, 9 }
  0x19   : > { %s1020_s6 = scalar_select %p807_p9, 1, 0 }
  0x1a   : > { %p812_p11 = pnand %p397_p8, %p155_p10  ;;  %s30_s8 = sadd.s32 1, %s692_s23 }
  0x1b   : > { %1021 = sst [smem:[#allocation15_spill]] %s1020_s6  ;;  %s33_s9 = sadd.s32 1, %s696_s24 }
  0x1c   : > { %p423_p12 = pneg %p812_p11  ;;  %p31_p0 = scmp.ge.s32.totalorder %s30_s8, 4 }
  0x1d   : > { %s1023_s0 = sld [smem:[#allocation18_spill]] }
  0x1e   : > { %p424_p13 = pnand %p423_p12, %p787_p1 }
  0x20   : > { %p533_p4 = pneg %p424_p13 }
  0x23   : > { %s531_s12 = scalar_lea.hbm %s1023_s0, 16 }
  0x24   : > { %p532_p2 = scmp.ne.s32.totalorder %s1023_s0, %s531_s12  ;;  %p538_p8 = scmp.lt.u32.totalorder %s531_s12, %s1023_s0 }
  0x26   : > { %p534_p5 = pnand %p533_p4, %p532_p2 }
  0x28   : > { %p535_p6 = pneg %p534_p5 }
  0x2a   : > { %p540_p10 = pnand %p538_p8, %p535_p6 }
  0x2c   : > { %543 = shalt.err (!%p540_p10)
}
  0x2d   : > { %s702_s27 = smov [#allocation3]   ;;  %s1052_s8 = smov (%p31_p0, %s30_s8), 0 }
  0x2e   : > { %426 = dma.hbm_to_smem (!%p424_p13), %s1023_s0, 16, %s702_s27, [#allocation6]  }
  0x2f   : > { %1024 = sst [smem:[#allocation16_spill]] %s1052_s8  ;;  %s1054_s9 = smov (!%p31_p0, %s33_s9), %s696_s24 }
  0x30   : > { %s100_s10 = ssub.s32 %s692_s23, %s1052_s8  ;;  %s105_s29 = sadd.s32 1, %s680_s20 }
  0x31   : > { %p35_p12 = scmp.ge.s32.totalorder %s1054_s9, 2  ;;  %p112_p2 = scmp.ne.s32.totalorder %s680_s20, %s676_s19 }
  0x32   : > { %p113_p4 = scmp.eq.s32.totalorder %s700_s25, 0  ;;  %p436_p5 = scmp.lt.s32.totalorder %s700_s25, 8 }
  0x33   : > { %s1056_s9 = smov (%p35_p12, %s1054_s9), 0  ;;  %s183_s11 = sand.u32 1, %s680_s20  }
  0x34   : > { %1025 = sst [smem:[#allocation17_spill]] %s1056_s9  ;;  %p846_p6 = por %p113_p4, %p112_p2 }
  0x35   : > { %s101_s12 = ssub.s32 %s696_s24, %s1056_s9  ;;  %s400_s14 = sshll.u32 %s183_s11, 3 }
  0x36   : > { %s102_s13 = sor.u32 %s101_s12, %s100_s10  ;;  %p129_p13 = scmp.eq.s32.totalorder %s101_s12, 0 }
  0x37   : > { %p103_p0 = scmp.eq.s32.totalorder %s102_s13, 0  ;;  %s1027_s18 = sadd.s32 1, %s668_s17 }
  0x38   : > { %s856_s26 = scalar_select %p129_p13, %s668_s17, %s1027_s18  }
  0x39   : > { %s859_s27 = scalar_select %p103_p0, %s680_s20, %s105_s29  }
  0x3a   : > { %s401_s0 = sshll.u32 %s692_s23, 1  ;;  %s187_s15 = scalar_lea.vmem [#allocation7], %s400_s14 }
  0x3b   : > { %s192_s8 = sadd.s32 %s696_s24, %s401_s0  ;;  %s196_s4 = sshll.u32 %s187_s15, 4  ;;  %s863_s4 = int_to_ptr.vmem [resolvable:$true] %s196_s4 }
  0x3c   : > { %s402_s5 = sshll.u32 %s192_s8, 7  ;;  %p874_p8 = pnand %p436_p5, %p846_p6 }
  0x3d   : > { %s868_s9 = scalar_lea.hbm %s998_s3, %s402_s5  ;;  %s184_s0 = scalar_lea.sflag [#allocation4], %s183_s11 }
  0x3e   : > { %s544_s15 = scalar_lea.hbm %s868_s9, 128  ;;  %p546_p12 = pneg %p874_p8 }
  0x3f   : > { %p545_p10 = scmp.ne.s32.totalorder %s868_s9, %s544_s15  ;;  %s549_s5 = scalar_lea.hbm %s998_s3, 1024 }
  0x40   : > { %p550_p5 = scmp.lt.u32.totalorder %s868_s9, %s998_s3  ;;  %p551_p6 = scmp.lt.u32.totalorder %s549_s5, %s544_s15 }
  0x41   : > { %p547_p2 = pnand %p546_p12, %p545_p10  ;;  %p553_p0 = scmp.lt.u32.totalorder %s544_s15, %s868_s9 }
  0x42   : > { %p552_p13 = por %p551_p6, %p550_p5 }
  0x43   : > { %p548_p4 = pneg %p547_p2 }
  0x44   : > { %p554_p9 = por %p553_p0, %p552_p13 }
  0x46   : > { %p555_p7 = pnand %p554_p9, %p548_p4 }
  0x48   : > { %558 = shalt.err (!%p555_p7)
}
  0x49   : > { %s559_s6 = scalar_lea.vmem %s863_s4, 128  ;;  %s703_s11 = smov [#allocation7]  }
  0x4a   : > { %p560_p10 = scmp.ne.s32.totalorder %s863_s4, %s559_s6  ;;  %s564_s12 = sshll.u32 %s703_s11, 4  ;;  %s565_s12 = int_to_ptr.vmem [resolvable:$false] %s564_s12 }
  0x4b   : > { %s566_s13 = scalar_lea.vmem %s565_s12, 256  ;;  %p567_p1 = scmp.lt.s32.totalorder %s863_s4, %s565_s12 }
  0x4c   : > { %p562_p2 = pnand %p560_p10, %p546_p12  ;;  %p568_p5 = scmp.lt.s32.totalorder %s566_s13, %s559_s6 }
  0x4e   : > { %p563_p3 = pneg %p562_p2  ;;  %p569_p6 = por %p568_p5, %p567_p1 }
  0x50   : > { %p570_p13 = pnand %p569_p6, %p563_p3 }
  0x52   : > { %573 = shalt.err (!%p570_p13)
}
  0x53   : > { %430 = dma.hbm_to_vmem [thread:$0]  (!%p874_p8), %s868_s9, 128, %s863_s4, %s184_s0  }
  0x54   : > { %205 = sbr.rel (%p812_p11) target bundleno = 465 (0x1d1), region = 36  ;;  %p1029_p7 = scmp.ne.s32.totalorder (!%p812_p11), %s1016_s28, 0 }
  0x5b   : > { %647 = dma.done.wait (%p1029_p7), [#allocation6], 16  }
  0x5c   : > { %649 = vsyncadd (%p1029_p7), [#allocation6], 4294967280  ;;  %s211_s14 = sand.u32 1, %s676_s19   ;;  %p1030_p1 = scmp.ne.s32.totalorder %s1017_s30, 0 }
  0x5d   : > { %s405_s18 = sshll.u32 %s211_s14, 3  ;;  %s212_s15 = scalar_lea.sflag [#allocation4], %s211_s14 }
  0x5e   : > { %s215_s2 = scalar_lea.vmem [#allocation7], %s405_s18 }
  0x5f   : > { %651 = dma.done.wait (%p1030_p1), %s212_s15, 128  }
  0x60   : > { %653 = vsyncadd (%p1030_p1), %s212_s15, 4294967168 }
  0x61   : > { %220 = sfence }
  0x62   : > { %s238_s4 = sand.u32 1, %s664_s16   ;;  %p407_p3 = scmp.ne.s32.totalorder %s684_s21, 0 }
  0x63   : > { %s917_s7 = sshll.u32 %s238_s4, 3  ;;  %v704_v0 = vmov (!%p407_p3), 0.0  }
  0x64   : > { %s240_s28 = scalar_lea.vmem [#allocation8], %s917_s7  ;;  %244 = sbr.rel (%p407_p3) target bundleno = 107 (0x6b), region = 48  ;;  %245 = vst [vmem:[#allocation2] sm:$0xff] (!%p407_p3), %v704_v0 }
  0x6b PF: > { %s247_s9 = sld [smem:[#allocation3 + %s684_s21]]  ;;  %v248_v1 = vld [vmem:[%s215_s2] sm:$0xff]  ;;  %v246_v2 = vld [vmem:[#allocation2] sm:$0xff]  ;;  %p408_p9 = scmp.ne.s32.totalorder %s684_s21, 3 }
  0x6c   : > { %v409_v15 = vld [vmem:[%s996_s1] ss:$0 sm:$0xff] (!%p408_p9)  ;;  %s1031_s22 = sld [smem:[#allocation19_spill]] (!%p408_p9) }
  0x70   : > { %256 = sbr.rel (%p408_p9) target bundleno = 438 (0x1b6), region = 52 }
  0x71   : > { %v249_v3 = vstv %s247_s9 }
  0x72   : > { %v250_v4 = vmul.f32 %v249_v3, %v248_v1  ;;  %v410_v17 = vld [vmem:[%s1031_s22] ss:$0 sm:$0xff] (!%p408_p9) }
  0x74   : > { %v251_v5 = vadd.f32 %v250_v4, %v246_v2 }
  0x76   : > { %252 = vst [vmem:[#allocation2] sm:$0xff] %v251_v5 }
  0x7d   : > { %v257_v6 = vld [vmem:[#allocation2] sm:$0xff] }
  0x7e   : > { %258 = vadd.xlane.f32.xlu0 %v257_v6 }
 0x10b   : > { %v259_v7 = vpop.xlane.xlu0 %258 }
 0x10c   : > { %v260_v8 = vmul.f32 0.0078125, %v259_v7 }
 0x10e   : > { %v261_v9 = vsub.f32 %v257_v6, %v260_v8 }
 0x110   : > { %v262_v10 = vmul.f32 %v261_v9, %v261_v9 }
 0x112   : > { %263 = vadd.xlane.f32.xlu0 %v262_v10 }
 0x19f   : > { %v264_v11 = vpop.xlane.xlu0 %263 }
 0x1a0   : > { %v265_v12 = vmul.f32 0.0078125, %v264_v11 }
 0x1a2   : > { %v266_v13 = vadd.f32 1e-05, %v265_v12 }
 0x1a4   : > { %529 = vrsqrt.f32 %v266_v13 }
 0x1ae   : > { %v530_v14 = vpop.eup %529 }
 0x1af   : > { %v268_v16 = vmul.f32 %v530_v14, %v261_v9 }
 0x1b1   : > { %v276_v18 = vmul.f32 %v409_v15, %v268_v16 }
 0x1b3   : > { %v284_v19 = vadd.f32 %v410_v17, %v276_v18 }
 0x1b5   : > { %285 = vst [vmem:[%s240_s28] sm:$0xff] %v284_v19 }
 0x1b6 PF: > { %s1032_s5 = sld [smem:[#allocation13_spill]]  ;;  %s1033_s8 = sld [smem:[#allocation14_spill]] }
 0x1b7   : > { %s1034_s12 = sld [smem:[#allocation20_spill]]  ;;  %s300_s14 = sshll.u32 %s240_s28, 4  ;;  %s301_s14 = int_to_ptr.vmem [resolvable:$true] %s300_s14 }
 0x1b8   : > { %s287_s18 = scalar_lea.sflag [#allocation5], %s238_s4  ;;  %s574_s15 = scalar_lea.vmem %s301_s14, 128 }
 0x1b9   : > { %p575_p11 = scmp.ne.s32.totalorder %s301_s14, %s574_s15  ;;  %s705_s2 = smov [#allocation8]  }
 0x1ba   : > { %s578_s9 = sshll.u32 %s705_s2, 4  ;;  %s579_s9 = int_to_ptr.vmem [resolvable:$false] %s578_s9 }
 0x1bb   : > { %s580_s30 = scalar_lea.vmem %s579_s9, 256  ;;  %p581_p0 = scmp.lt.s32.totalorder %s301_s14, %s579_s9 }
 0x1bc   : > { %s412_s29 = sshll.u32 %s1032_s5, 7  ;;  %p1035_p8 = scmp.ne.s32.totalorder %s1033_s8, 0 }
 0x1bd   : > { %s935_s13 = scalar_lea.hbm %s1034_s12, %s412_s29  ;;  %p582_p10 = scmp.lt.s32.totalorder %s580_s30, %s574_s15 }
 0x1be   : > { %p576_p12 = pnand %p575_p11, %p1035_p8 }
 0x1bf   : > { %p583_p2 = por %p582_p10, %p581_p0 }
 0x1c0   : > { %p577_p4 = pneg %p576_p12 }
 0x1c2   : > { %p584_p5 = pnand %p583_p2, %p577_p4 }
 0x1c4   : > { %587 = shalt.err (!%p584_p5)
}
 0x1c5   : > { %s588_s4 = scalar_lea.hbm %s935_s13, 128  ;;  %s592_s10 = scalar_lea.hbm %s1034_s12, 256 }
 0x1c6   : > { %p589_p6 = scmp.ne.s32.totalorder %s935_s13, %s588_s4  ;;  %p593_p1 = scmp.lt.u32.totalorder %s935_s13, %s1034_s12 }
 0x1c7   : > { %p594_p3 = scmp.lt.u32.totalorder %s592_s10, %s588_s4  ;;  %p596_p11 = scmp.lt.u32.totalorder %s588_s4, %s935_s13 }
 0x1c8   : > { %p590_p13 = pnand %p589_p6, %p1035_p8 }
 0x1c9   : > { %p595_p9 = por %p594_p3, %p593_p1 }
 0x1ca   : > { %p591_p7 = pneg %p590_p13 }
 0x1cb   : > { %p597_p12 = por %p596_p11, %p595_p9 }
 0x1cd   : > { %p598_p4 = pnand %p597_p12, %p591_p7 }
 0x1cf   : > { %601 = shalt.err (!%p598_p4)
}
 0x1d0   : > { %421 = dma.vmem_to_hbm [thread:$0]  (%p1035_p8), %s301_s14, 128, %s935_s13, %s287_s18  }
 0x1d1 PF: > { %s1036_s22 = sld [smem:[#allocation12_spill]]  ;;  %s1037_s5 = sld [smem:[#allocation15_spill]] }
 0x1d2   : > { %p438_p0 = scmp.ge.s32.totalorder %s700_s25, 2 }
 0x1d7   : > { %s312_s29 = sand.u32 1, %s1036_s22   ;;  %p1038_p10 = scmp.ne.s32.totalorder %s1037_s5, 0 }
 0x1d8   : > { %s313_s6 = scalar_lea.sflag [#allocation5], %s312_s29 }
 0x1d9   : > { %p432_p2 = pnand %p438_p0, %p1038_p10 }
 0x1db   : > { %655 = dma.done.wait (!%p432_p2), %s313_s6, 128  }
 0x1dc   : > { %657 = vsyncadd (!%p432_p2), %s313_s6, 4294967168  ;;  %s21_s25 = sadd.s32 1, %s700_s25   ;;  %s1039_s8 = sld [smem:[#allocation16_spill]] }
 0x1dd   : > { %p18_p5 = scmp.ge.s32.totalorder %s21_s25, 10   ;;  %s1040_s11 = sld [smem:[#allocation17_spill]] }
 0x1de   : > { %s1041_s15 = smov %s664_s16  ;;  %s1042_s16 = smov %s668_s17 }
 0x1df   : > { %s1043_s17 = smov %s856_s26  ;;  %s1044_s18 = smov %s676_s19 }
 0x1e0   : > { %s1045_s19 = smov %s680_s20  ;;  %s1046_s20 = smov %s859_s27 }
 0x1e1   : > { %s1047_s21 = smov %s692_s23  ;;  %s1048_s22 = smov %s696_s24 }
 0x1e2   : > { %s1049_s23 = smov %s1039_s8  ;;  %20 = sbr.rel (!%p18_p5) target bundleno = 14 (0xe), region = 94 }
 0x1e3   : > { %s1050_s24 = smov %s1040_s11 }
 0x1e9   :  { %318 = vsyncpa [#allocation4], 1 }
 0x1ea   :  { %320 = vsyncpa [#allocation4 + $0x1], 1 }
 0x1eb   :  { %321 = vsyncpa [#allocation5], 1 }
 0x1ec   :  { %323 = vsyncpa [#allocation5 + $0x1], 1 }
 0x1ed   :  { %324 = vsyncpa [#allocation6], 1 }
 0x1ee   :  { %326 = vsyncpa [#allocation6 + $0x1], 1 }

</bundles_post_ra>
